<compile_context>
chip_gen: v5e
topology: v5e:2x2
jax: 0.10.0
libtpu: 0.0.40
codegen_flags: <defaults>
</compile_context>

<pallas_src>
import jax
import jax.numpy as jnp
from jax.experimental import pallas as pl
from jax.experimental.pallas import tpu as pltpu

D_IN, D_HID, D_OUT = 784, 128, 10
D_OUT_PAD = 128  # lane-dense padded fc2 width for the MXU (compute-only padding)


def _round_up(x, m):
    return ((x + m - 1) // m) * m


def mlp_kernel(x_ref, w1_ref, b1_ref, w2_ref, b2_ref, o_ref):
    # fc1: cast x to bf16 in-kernel (hidden under DMA), f32 MXU accumulation.
    x_bf = x_ref[...].astype(jnp.bfloat16)
    h = jnp.dot(x_bf, w1_ref[...], preferred_element_type=jnp.float32)
    h = jnp.maximum(h + b1_ref[...], 0.0)  # bias + ReLU in f32

    # fc2 on a 128-lane padded output tile: (tb, 128)bf16 @ (128, 128)bf16.
    # NOTE: h is downcast to bf16 for the MXU; source of the ~2e-2 tolerance.
    logits = jnp.dot(h.astype(jnp.bfloat16), w2_ref[...],
                     preferred_element_type=jnp.float32)
    # Padded w2 columns are zero and padded b2 columns are -1e30, so this single
    # bias add also masks the pad columns out of the softmax (exp underflows to 0).
    logits = logits + b2_ref[...]

    # Numerically-stable softmax over the (padded) feature axis.
    m = jnp.max(logits, axis=1, keepdims=True)
    e = jnp.exp(logits - m)
    denom = jnp.sum(e, axis=1, keepdims=True)
    inv = pl.reciprocal(denom, approx=True)
    # Store only the 10 real output columns (narrow masked vst; vst slot has slack).
    o_ref[...] = (e[:, :D_OUT] * inv).astype(o_ref.dtype)


def my_mlp(x, w1, b1, w2, b2, *, block_b=1024):
    """x: (B, 784); w1: (784,128); b1: (1,128); w2: (128,10); b2: (1,10)."""
    B = x.shape[0]
    # Batch tile: multiple of 8 sublanes, <= block_b rows, and capped at ~B/2 so
    # the grid length stays >= 2 for large B (lets v7x shard across its 2 TCs).
    tb = max(8, min(block_b, _round_up(pl.cdiv(B, 2), 8)))
    grid = (pl.cdiv(B, tb),)  # ragged last block allowed: OOB rows are discarded

    # Weights are small and read once (VMEM-resident): bf16 cast here is negligible.
    w1_bf = w1.astype(jnp.bfloat16)
    b1_f = jnp.reshape(b1, (1, D_HID)).astype(jnp.float32)
    # Lane-dense fc2: zero-pad w2 columns 10 -> 128; bake the softmax mask into b2.
    w2_p = jnp.zeros((D_HID, D_OUT_PAD), jnp.bfloat16).at[:, :D_OUT].set(
        w2.astype(jnp.bfloat16))
    b2_p = jnp.full((1, D_OUT_PAD), -1e30, jnp.float32).at[:, :D_OUT].set(
        jnp.reshape(b2, (1, D_OUT)).astype(jnp.float32))

    cost = pl.CostEstimate(
        flops=2 * B * (D_IN * D_HID + D_HID * D_OUT_PAD),
        transcendentals=B * D_OUT_PAD,
        bytes_accessed=(x.size * x.dtype.itemsize
                        + w1_bf.size * 2 + w2_p.size * 2
                        + b1_f.size * 4 + b2_p.size * 4
                        + B * D_OUT * 4),
    )

    out = pl.pallas_call(
        mlp_kernel,
        out_shape=jax.ShapeDtypeStruct((B, D_OUT), jnp.float32),
        grid_spec=pltpu.PrefetchScalarGridSpec(
            num_scalar_prefetch=0,
            grid=grid,
            in_specs=[
                pl.BlockSpec((tb, D_IN), lambda i: (i, 0)),          # x: batch-tiled
                pl.BlockSpec((D_IN, D_HID), lambda i: (0, 0)),       # w1: resident
                pl.BlockSpec((1, D_HID), lambda i: (0, 0)),          # b1: resident
                pl.BlockSpec((D_HID, D_OUT_PAD), lambda i: (0, 0)),  # w2: resident
                pl.BlockSpec((1, D_OUT_PAD), lambda i: (0, 0)),      # b2: resident
            ],
            out_specs=pl.BlockSpec((tb, D_OUT), lambda i: (i, 0)),   # narrow output
        ),
        compiler_params=pltpu.CompilerParams(
            dimension_semantics=("parallel",),  # batch tiles shard across TCs (v7x)
        ),
        cost_estimate=cost,
    )(x, w1_bf, b1_f, w2_p, b2_p)

    return out


def reference_mlp(x, w1, b1, w2, b2):
    h = jnp.maximum(x @ w1 + b1, 0.0)
    logits = h @ w2 + b2
    return jax.nn.softmax(logits, axis=1)


if __name__ == "__main__":
    key = jax.random.PRNGKey(0)
    k_x, k_w1, k_b1, k_w2, k_b2 = jax.random.split(key, 5)

    B = 8  # small demo batch; kernel tiles/scales for large B automatically
    x = jax.random.normal(k_x, (B, D_IN), dtype=jnp.float32)

    # Deterministic parameter init (PyTorch-Linear-style uniform bounds).
    bound1 = 1.0 / (D_IN ** 0.5)
    bound2 = 1.0 / (D_HID ** 0.5)
    w1 = jax.random.uniform(k_w1, (D_IN, D_HID), jnp.float32, -bound1, bound1)
    b1 = jax.random.uniform(k_b1, (1, D_HID), jnp.float32, -bound1, bound1)
    w2 = jax.random.uniform(k_w2, (D_HID, D_OUT), jnp.float32, -bound2, bound2)
    b2 = jax.random.uniform(k_b2, (1, D_OUT), jnp.float32, -bound2, bound2)

    out = jax.jit(my_mlp)(x, w1, b1, w2, b2)
    jax.block_until_ready(out)

    ref = reference_mlp(x, w1, b1, w2, b2)
    assert out.shape == (B, D_OUT)
    # bf16 MXU inputs + approx reciprocal -> relaxed (but tight for probabilities)
    # tolerances.
    assert jnp.allclose(out, ref, atol=2e-2, rtol=0.0), (
        f"max abs err {jnp.max(jnp.abs(out - ref))}")
    # Rows of softmax output sum to ~1 (approx reciprocal -> ~1e-3 slack).
    assert jnp.allclose(jnp.sum(out, axis=1), jnp.ones((B,)), atol=5e-3)
    # Output is a valid probability distribution (pad columns never stored).
    assert bool(jnp.all(out >= 0.0))

    print("KERNEL_OK")
</pallas_src>

<mosaic_0001>
module attributes {stable_mosaic.version = 11 : i64} {
  func.func @mlp_kernel(%arg0: i32, %arg1: memref<8x784xf32, #tpu.memory_space<vmem>>, %arg2: memref<784x128xbf16, #tpu.memory_space<vmem>>, %arg3: memref<1x128xf32, #tpu.memory_space<vmem>>, %arg4: memref<128x128xbf16, #tpu.memory_space<vmem>>, %arg5: memref<1x128xf32, #tpu.memory_space<vmem>>, %arg6: memref<8x10xf32, #tpu.memory_space<vmem>>) attributes {dimension_semantics = [#tpu.dimension_semantics<parallel>], iteration_bounds = array<i64: 1>, scalar_prefetch = 0 : i64, scratch_operands = 0 : i64, tpu.core_type = #tpu.core_type<tc>, window_params = [{transform_indices = @transform_0, window_bounds = array<i64: 8, 784>}, {pipeline_mode = #tpu.pipeline_mode<synchronous>, transform_indices = @transform_1, window_bounds = array<i64: 784, 128>}, {pipeline_mode = #tpu.pipeline_mode<synchronous>, transform_indices = @transform_2, window_bounds = array<i64: 1, 128>}, {pipeline_mode = #tpu.pipeline_mode<synchronous>, transform_indices = @transform_3, window_bounds = array<i64: 128, 128>}, {pipeline_mode = #tpu.pipeline_mode<synchronous>, transform_indices = @transform_4, window_bounds = array<i64: 1, 128>}, {transform_indices = @transform_5, window_bounds = array<i64: 8, 10>}]} {
    %c0 = arith.constant 0 : index
    %c0_0 = arith.constant 0 : index
    %0 = vector.load %arg1[%c0, %c0_0] : memref<8x784xf32, #tpu.memory_space<vmem>>, vector<8x784xf32>
    %1 = arith.truncf %0 : vector<8x784xf32> to vector<8x784xbf16>
    %c0_1 = arith.constant 0 : index
    %c0_2 = arith.constant 0 : index
    %2 = vector.load %arg2[%c0_1, %c0_2] : memref<784x128xbf16, #tpu.memory_space<vmem>>, vector<784x128xbf16>
    %cst = arith.constant dense<0.000000e+00> : vector<8x128xf32>
    %3 = tpu.matmul %1, %2, %cst {dimension_numbers = #tpu.dot_dimension_numbers<[1], [0], [0], [1], [0, 0, 1, 1], [], []>} : vector<8x784xbf16>, vector<784x128xbf16>, vector<8x128xf32> -> vector<8x128xf32>
    %c0_3 = arith.constant 0 : index
    %c0_4 = arith.constant 0 : index
    %4 = vector.load %arg3[%c0_3, %c0_4] : memref<1x128xf32, #tpu.memory_space<vmem>>, vector<1x128xf32>
    %5 = vector.broadcast %4 : vector<1x128xf32> to vector<8x128xf32>
    %6 = arith.addf %3, %5 : vector<8x128xf32>
    %cst_5 = arith.constant 0.000000e+00 : f32
    %7 = vector.broadcast %cst_5 : f32 to vector<8x128xf32>
    %8 = arith.maximumf %6, %7 : vector<8x128xf32>
    %9 = arith.truncf %8 : vector<8x128xf32> to vector<8x128xbf16>
    %c0_6 = arith.constant 0 : index
    %c0_7 = arith.constant 0 : index
    %10 = vector.load %arg4[%c0_6, %c0_7] : memref<128x128xbf16, #tpu.memory_space<vmem>>, vector<128x128xbf16>
    %cst_8 = arith.constant dense<0.000000e+00> : vector<8x128xf32>
    %11 = tpu.matmul %9, %10, %cst_8 {dimension_numbers = #tpu.dot_dimension_numbers<[1], [0], [0], [1], [0, 0, 1, 1], [], []>} : vector<8x128xbf16>, vector<128x128xbf16>, vector<8x128xf32> -> vector<8x128xf32>
    %c0_9 = arith.constant 0 : index
    %c0_10 = arith.constant 0 : index
    %12 = vector.load %arg5[%c0_9, %c0_10] : memref<1x128xf32, #tpu.memory_space<vmem>>, vector<1x128xf32>
    %13 = vector.broadcast %12 : vector<1x128xf32> to vector<8x128xf32>
    %14 = arith.addf %11, %13 : vector<8x128xf32>
    %cst_11 = arith.constant dense<0xFF800000> : vector<8xf32>
    %15 = vector.multi_reduction <maximumf>, %14, %cst_11 [1] : vector<8x128xf32> to vector<8xf32>
    %16 = vector.shape_cast %15 : vector<8xf32> to vector<8x1xf32>
    %17 = vector.broadcast %16 : vector<8x1xf32> to vector<8x128xf32>
    %18 = arith.subf %14, %17 : vector<8x128xf32>
    %19 = math.exp %18 : vector<8x128xf32>
    %cst_12 = arith.constant dense<0.000000e+00> : vector<8xf32>
    %20 = vector.multi_reduction <add>, %19, %cst_12 [1] : vector<8x128xf32> to vector<8xf32>
    %21 = vector.shape_cast %20 : vector<8xf32> to vector<8x1xf32>
    %22 = tpu.reciprocal %21 {approx = true} : vector<8x1xf32> -> vector<8x1xf32>
    %23 = vector.extract_strided_slice %19 {offsets = [0, 0], sizes = [8, 10], strides = [1, 1]} : vector<8x128xf32> to vector<8x10xf32>
    %24 = vector.broadcast %22 : vector<8x1xf32> to vector<8x10xf32>
    %25 = arith.mulf %23, %24 : vector<8x10xf32>
    %c0_13 = arith.constant 0 : index
    %c0_14 = arith.constant 0 : index
    %26 = vector.load %arg6[%c0_13, %c0_14] : memref<8x10xf32, #tpu.memory_space<vmem>>, vector<8x10xf32>
    tpu.vector_store %arg6[%c0_13, %c0_14], %25 {strides = array<i32>} : memref<8x10xf32, #tpu.memory_space<vmem>>, vector<8x10xf32>,
    return
  }
  func.func @transform_0(%arg0: i32) -> (i32, i32) {
    %c0_i32 = arith.constant 0 : i32
    %c0_i32_0 = arith.constant 0 : i32
    return %arg0, %c0_i32 : i32, i32
  }
  func.func @transform_1(%arg0: i32) -> (i32, i32) {
    %c0_i32 = arith.constant 0 : i32
    %c0_i32_0 = arith.constant 0 : i32
    %c0_i32_1 = arith.constant 0 : i32
    return %c0_i32, %c0_i32_0 : i32, i32
  }
  func.func @transform_2(%arg0: i32) -> (i32, i32) {
    %c0_i32 = arith.constant 0 : i32
    %c0_i32_0 = arith.constant 0 : i32
    %c0_i32_1 = arith.constant 0 : i32
    return %c0_i32, %c0_i32_0 : i32, i32
  }
  func.func @transform_3(%arg0: i32) -> (i32, i32) {
    %c0_i32 = arith.constant 0 : i32
    %c0_i32_0 = arith.constant 0 : i32
    %c0_i32_1 = arith.constant 0 : i32
    return %c0_i32, %c0_i32_0 : i32, i32
  }
  func.func @transform_4(%arg0: i32) -> (i32, i32) {
    %c0_i32 = arith.constant 0 : i32
    %c0_i32_0 = arith.constant 0 : i32
    %c0_i32_1 = arith.constant 0 : i32
    return %c0_i32, %c0_i32_0 : i32, i32
  }
  func.func @transform_5(%arg0: i32) -> (i32, i32) {
    %c0_i32 = arith.constant 0 : i32
    %c0_i32_0 = arith.constant 0 : i32
    return %arg0, %c0_i32 : i32, i32
  }
}

</mosaic_0001>

<bundles_post_ra>
// kernel: my_mlp.1
= control target key start
LH: loop header
LB: loop body
LE: loop exit
PB: predicated region body
PF: predicated region fallthrough
CT: control target
= control target key end

     0   :  { %s1188_s0 = inlined_call_operand.vmem [shape: f32[8,784], index: 0, kind: input, shape index: {}]   ;;  %s1189_s1 = inlined_call_operand.vmem [shape: bf16[784,128], index: 1, kind: input, shape index: {}]   ;;  %s1190_s2 = inlined_call_operand.vmem [shape: f32[1,128], index: 2, kind: input, shape index: {}]   ;;  %s1191_s3 = inlined_call_operand.vmem [shape: bf16[128,128], index: 3, kind: input, shape index: {}]   ;;  %s1192_s4 = inlined_call_operand.vmem [shape: f32[1,128], index: 4, kind: input, shape index: {}]   ;;  %s1193_s5 = inlined_call_operand.hbm [shape: f32[8,10], index: 5, kind: output, shape index: {}]  }
   0x1   :  { %v873_v0 = vld [vmem:[%s1189_s1 + $0x38] sm:$0xff]  ;;  %v872_v3 = vld [vmem:[%s1189_s1 + $0x30] sm:$0xff]  ;;  %v871_v8 = vld [vmem:[%s1189_s1 + $0x28] sm:$0xff] }
   0x2   :  { %v881_v1 = vld [vmem:[%s1189_s1 + $0x78] sm:$0xff]  ;;  %436 = vmatpush.bf16.msra.mxu0 %v873_v0  ;;  %v880_v4 = vld [vmem:[%s1189_s1 + $0x70] sm:$0xff]  ;;  %v879_v9 = vld [vmem:[%s1189_s1 + $0x68] sm:$0xff] }
   0x3   :  { %v889_v2 = vld [vmem:[%s1189_s1 + $0xb8] sm:$0xff]  ;;  %449 = vmatpush.bf16.msra.mxu1 %v881_v1  ;;  %v888_v5 = vld [vmem:[%s1189_s1 + $0xb0] sm:$0xff]  ;;  %v887_v10 = vld [vmem:[%s1189_s1 + $0xa8] sm:$0xff] }
   0x4   :  { %462 = vmatpush.bf16.msra.mxu2 %v889_v2  ;;  %v897_v6 = vld [vmem:[%s1189_s1 + $0xf8] sm:$0xff]  ;;  %v896_v7 = vld [vmem:[%s1189_s1 + $0xf0] sm:$0xff]  ;;  %v895_v11 = vld [vmem:[%s1189_s1 + $0xe8] sm:$0xff] }
   0x5   :  { %475 = vmatpush.bf16.msra.mxu3 %v897_v6  ;;  %v870_v12 = vld [vmem:[%s1189_s1 + $0x20] sm:$0xff]  ;;  %v869_v16 = vld [vmem:[%s1189_s1 + $0x18] sm:$0xff] }
   0x6   :  { %437 = vmatpush.bf16.msra.mxu0 %v872_v3  ;;  %v878_v13 = vld [vmem:[%s1189_s1 + $0x60] sm:$0xff]  ;;  %v877_v17 = vld [vmem:[%s1189_s1 + $0x58] sm:$0xff] }
   0x7   :  { %450 = vmatpush.bf16.msra.mxu1 %v880_v4  ;;  %v886_v14 = vld [vmem:[%s1189_s1 + $0xa0] sm:$0xff]  ;;  %v885_v18 = vld [vmem:[%s1189_s1 + $0x98] sm:$0xff] }
   0x8   :  { %463 = vmatpush.bf16.msra.mxu2 %v888_v5  ;;  %v894_v15 = vld [vmem:[%s1189_s1 + $0xe0] sm:$0xff] }
   0x9   :  { %476 = vmatpush.bf16.msra.mxu3 %v896_v7 }
   0xa   :  { %438 = vmatpush.bf16.msra.mxu0 %v871_v8 }
   0xb   :  { %451 = vmatpush.bf16.msra.mxu1 %v879_v9 }
   0xc   :  { %464 = vmatpush.bf16.msra.mxu2 %v887_v10 }
   0xd   :  { %477 = vmatpush.bf16.msra.mxu3 %v895_v11 }
   0xe   :  { %439 = vmatpush.bf16.msra.mxu0 %v870_v12 }
   0xf   :  { %452 = vmatpush.bf16.msra.mxu1 %v878_v13 }
  0x10   :  { %465 = vmatpush.bf16.msra.mxu2 %v886_v14 }
  0x11   :  { %10 = vsyncpa [#allocation3], 0  ;;  %478 = vmatpush.bf16.msra.mxu3 %v894_v15  ;;  %v893_v19 = vld [vmem:[%s1189_s1 + $0xd8] sm:$0xff]  ;;  %v868_v20 = vld [vmem:[%s1189_s1 + $0x10] sm:$0xff]  ;;  %vm432_vm0 = vcmask 130048   ;;  %s956_s21 = smov [#allocation2]  }
  0x12   :  { %440 = vmatpush.bf16.msra.mxu0 %v869_v16  ;;  %v876_v21 = vld [vmem:[%s1189_s1 + $0x50] sm:$0xff]  ;;  %v867_v24 = vld [vmem:[%s1189_s1 + $0x8] sm:$0xff]  ;;  %v866_v27 = vld [vmem:[%s1189_s1] sm:$0xff]  ;;  %s626_s22 = sshll.u32 %s956_s21, 4  ;;  %s628_s25 = sshll.u32 %s1193_s5, 4  ;;  %vm619_vm1 = vcmask 80896   ;;  %s627_s22 = int_to_ptr.vmem [resolvable:$true] %s626_s22  ;;  %s629_s25 = int_to_ptr.hbm [resolvable:$true] %s628_s25 }
  0x13   :  { %453 = vmatpush.bf16.msra.mxu1 %v877_v17  ;;  %v884_v22 = vld [vmem:[%s1189_s1 + $0x90] sm:$0xff]  ;;  %v875_v25 = vld [vmem:[%s1189_s1 + $0x48] sm:$0xff]  ;;  %v874_v29 = vld [vmem:[%s1189_s1 + $0x40] sm:$0xff] }
  0x14   :  { %466 = vmatpush.bf16.msra.mxu2 %v885_v18  ;;  %v892_v23 = vld [vmem:[%s1189_s1 + $0xd0] sm:$0xff]  ;;  %v883_v26 = vld [vmem:[%s1189_s1 + $0x88] sm:$0xff]  ;;  %v22_v30 = vld [vmem:[%s1188_s0] sm:$0xff] }
  0x15   :  { %479 = vmatpush.bf16.msra.mxu3 %v893_v19  ;;  %v891_v28 = vld [vmem:[%s1189_s1 + $0xc8] sm:$0xff]  ;;  %v905_v32 = vld [vmem:[%s1189_s1 + $0x138] sm:$0xff]  ;;  %v882_v34 = vld [vmem:[%s1189_s1 + $0x80] sm:$0xff]  ;;  %v29_v36 = vpack.c.bf16 %v22_v30, %v22_v30 }
  0x16   :  { %441 = vmatpush.bf16.msra.mxu0 %v868_v20  ;;  %v23_v31 = vld [vmem:[%s1188_s0 + $0x8] sm:$0xff]  ;;  %v913_v33 = vld [vmem:[%s1189_s1 + $0x178] sm:$0xff]  ;;  %v24_v35 = vld [vmem:[%s1188_s0 + $0x10] sm:$0xff] }
  0x17   :  { %454 = vmatpush.bf16.msra.mxu1 %v876_v21  ;;  %v30_v37 = vpack.c.bf16 %v23_v31, %v23_v31  ;;  %v890_v38 = vld [vmem:[%s1189_s1 + $0xc0] sm:$0xff]  ;;  %v25_v40 = vld [vmem:[%s1188_s0 + $0x18] sm:$0xff]  ;;  %v904_v41 = vld [vmem:[%s1189_s1 + $0x130] sm:$0xff]  ;;  %v31_v43 = vpack.c.bf16 %v24_v35, %v24_v35 }
  0x18   :  { %467 = vmatpush.bf16.msra.mxu2 %v884_v22  ;;  %v914_v39 = vld [vmem:[%s1189_s1 + $0x180] sm:$0xff]  ;;  %v912_v42 = vld [vmem:[%s1189_s1 + $0x170] sm:$0xff]  ;;  %v32_v44 = vpack.c.bf16 %v25_v40, %v25_v40  ;;  %v903_v45 = vld [vmem:[%s1189_s1 + $0x128] sm:$0xff] }
  0x19   :  { %480 = vmatpush.bf16.msra.mxu3 %v892_v23  ;;  %v911_v46 = vld [vmem:[%s1189_s1 + $0x168] sm:$0xff]  ;;  %v902_v47 = vld [vmem:[%s1189_s1 + $0x120] sm:$0xff]  ;;  %v901_v49 = vld [vmem:[%s1189_s1 + $0x118] sm:$0xff] }
  0x1a   :  { %442 = vmatpush.bf16.msra.mxu0 %v867_v24  ;;  %v910_v48 = vld [vmem:[%s1189_s1 + $0x160] sm:$0xff]  ;;  %v909_v50 = vld [vmem:[%s1189_s1 + $0x158] sm:$0xff]  ;;  %v28_v51 = vld [vmem:[%s1188_s0 + $0x30] sm:$0xff] }
  0x1b   :  { %455 = vmatpush.bf16.msra.mxu1 %v875_v25  ;;  %v900_v52 = vld [vmem:[%s1189_s1 + $0x110] sm:$0xff]  ;;  %v35_v54 = vpack.c.bf16 %v28_v51, %v28_v51  ;;  %v899_v55 = vld [vmem:[%s1189_s1 + $0x108] sm:$0xff]  ;;  %v898_v57 = vld [vmem:[%s1189_s1 + $0x100] sm:$0xff] }
  0x1c   :  { %468 = vmatpush.bf16.msra.mxu2 %v883_v26  ;;  %v908_v53 = vld [vmem:[%s1189_s1 + $0x150] sm:$0xff]  ;;  %v907_v56 = vld [vmem:[%s1189_s1 + $0x148] sm:$0xff]  ;;  %v906_v58 = vld [vmem:[%s1189_s1 + $0x140] sm:$0xff] }
  0x1d   :  { %481 = vmatpush.bf16.msra.mxu3 %v891_v28  ;;  %v26_v59 = vld [vmem:[%s1188_s0 + $0x20] sm:$0xff]  ;;  %v27_v60 = vld [vmem:[%s1188_s0 + $0x28] sm:$0xff]  ;;  %v922_v63 = vld [vmem:[%s1191_s3 + $0x38] sm:$0xff] }
  0x1e   :  { %443 = vmatpush.bf16.msra.mxu0 %v866_v27  ;;  %v33_v61 = vpack.c.bf16 %v26_v59, %v26_v59  ;;  %v34_v62 = vpack.c.bf16 %v27_v60, %v27_v60  ;;  %v921_v0 = vld [vmem:[%s1191_s3 + $0x30] sm:$0xff]  ;;  %v920_v1 = vld [vmem:[%s1191_s3 + $0x28] sm:$0xff]  ;;  %v919_v2 = vld [vmem:[%s1191_s3 + $0x20] sm:$0xff] }
  0x1f   :  { %456 = vmatpush.bf16.msra.mxu1 %v874_v29  ;;  %v918_v3 = vld [vmem:[%s1191_s3 + $0x18] sm:$0xff]  ;;  %v917_v4 = vld [vmem:[%s1191_s3 + $0x10] sm:$0xff]  ;;  %v916_v5 = vld [vmem:[%s1191_s3 + $0x8] sm:$0xff] }
  0x20   :  { %469 = vmatpush.bf16.msra.mxu2 %v882_v34  ;;  %v915_v8 = vld [vmem:[%s1191_s3] sm:$0xff] }
  0x21   :  { %444 = vmatmul.bf16.vlgmr.msra.gmra.mxu0 %v29_v36  ;;  %482 = vmatpush.bf16.msra.mxu3 %v890_v38  ;;  %v924_v13 = vld [vmem:[%s1190_s2] ss:$0 sm:$0xff] }
  0x22   :  { %488 = vmatpush.bf16.msrb.mxu0 %v905_v32  ;;  %457 = vmatmul.bf16.vlgmr.msra.gmra.mxu1 %v30_v37  ;;  %v925_v31 = vld [vmem:[%s1192_s4] ss:$0 sm:$0xff] }
  0x23   :  { %501 = vmatpush.bf16.msrb.mxu1 %v913_v33  ;;  %470 = vmatmul.bf16.vlgmr.msra.gmra.mxu2 %v31_v43 }
  0x24   :  { %521 = vmatpush.bf16.msrb.mxu2 %v914_v39  ;;  %483 = vmatmul.bf16.vlgmr.msra.gmra.mxu3 %v32_v44 }
  0x25   :  { %597 = vmatpush.bf16.msrb.mxu3 %v922_v63 }
  0x26   :  { %489 = vmatpush.bf16.msrb.mxu0 %v904_v41 }
  0x27   :  { %502 = vmatpush.bf16.msrb.mxu1 %v912_v42 }
  0x29   :  { %598 = vmatpush.bf16.msrb.mxu3 %v921_v0 }
  0x2a   :  { %490 = vmatpush.bf16.msrb.mxu0 %v903_v45 }
  0x2b   :  { %503 = vmatpush.bf16.msrb.mxu1 %v911_v46 }
  0x2d   :  { %599 = vmatpush.bf16.msrb.mxu3 %v920_v1 }
  0x2e   :  { %491 = vmatpush.bf16.msrb.mxu0 %v902_v47 }
  0x2f   :  { %504 = vmatpush.bf16.msrb.mxu1 %v910_v48 }
  0x31   :  { %600 = vmatpush.bf16.msrb.mxu3 %v919_v2 }
  0x32   :  { %492 = vmatpush.bf16.msrb.mxu0 %v901_v49 }
  0x33   :  { %505 = vmatpush.bf16.msrb.mxu1 %v909_v50  ;;  %833 = vmatmul.msk.bf16.vlgmr.msrb.gmra.mxu2 %vm432_vm0, %v35_v54 }
  0x35   :  { %601 = vmatpush.bf16.msrb.mxu3 %v918_v3 }
  0x36   :  { %493 = vmatpush.bf16.msrb.mxu0 %v900_v52 }
  0x37   :  { %506 = vmatpush.bf16.msrb.mxu1 %v908_v53 }
  0x39   :  { %602 = vmatpush.bf16.msrb.mxu3 %v917_v4 }
  0x3a   :  { %494 = vmatpush.bf16.msrb.mxu0 %v899_v55 }
  0x3b   :  { %507 = vmatpush.bf16.msrb.mxu1 %v907_v56 }
  0x3d   :  { %603 = vmatpush.bf16.msrb.mxu3 %v916_v5 }
  0x3e   :  { %495 = vmatpush.bf16.msrb.mxu0 %v898_v57 }
  0x3f   :  { %508 = vmatpush.bf16.msrb.mxu1 %v906_v58 }
  0x41   :  { %496 = vmatmul.bf16.vlgmr.msrb.gmra.mxu0 %v33_v61  ;;  %604 = vmatpush.bf16.msrb.mxu3 %v915_v8 }
  0x42   :  { %509 = vmatmul.bf16.vlgmr.msrb.gmra.mxu1 %v34_v62 }
  0x9e   :  { %v445_v6 = vpop.f32.mrf.mxu0 }
  0x9f   :  { %v458_v7 = vpop.f32.mrf.mxu1  ;;  %v446_v14 = vadd.f32 %v924_v13, %v445_v6 }
  0xa1   :  { %v459_v17 = vadd.f32 %v458_v7, %v446_v14 }
  0xa6   :  { %v447_v9 = vpop.f32.mrf.mxu0  ;;  %v471_v11 = vpop.f32.mrf.mxu2 }
  0xa7   :  { %v460_v10 = vpop.f32.mrf.mxu1  ;;  %v484_v12 = vpop.f32.mrf.mxu3  ;;  %v472_v18 = vadd.f32 %v471_v11, %v459_v17 }
  0xa9   :  { %v485_v20 = vadd.f32 %v484_v12, %v472_v18 }
  0xae   :  { %v473_v15 = vpop.f32.mrf.mxu2 }
  0xaf   :  { %v486_v16 = vpop.f32.mrf.mxu3 }
  0xb6   :  { %v523_v19 = vpop.f32.mrf.mxu2 }
  0xbe   :  { %v497_v21 = vpop.f32.mrf.mxu0  ;;  %v525_v25 = vpop.f32.mrf.mxu2 }
  0xbf   :  { %v510_v22 = vpop.f32.mrf.mxu1  ;;  %v498_v23 = vadd.f32 %v497_v21, %v485_v20 }
  0xc1   :  { %v511_v24 = vadd.f32 %v510_v22, %v498_v23 }
  0xc3   :  { %v524_v26 = vadd.f32 %v523_v19, %v511_v24 }
  0xc5   :  { %v527_v27 = vmax.f32 %v524_v26, 0.0 }
  0xc6   :  { %v499_v28 = vpop.f32.mrf.mxu0 }
  0xc7   :  { %v512_v29 = vpop.f32.mrf.mxu1  ;;  %v528_v30 = vpack.c.bf16 %v527_v27, %v527_v27 }
  0xc9   :  { %605 = vmatmul.bf16.vlgmr.msrb.gmra.mxu3 %v528_v30 }
 0x14c   :  { %v606_v32 = vpop.f32.mrf.mxu3 }
 0x14d   :  { %v607_v33 = vadd.f32 %v925_v31, %v606_v32 }
 0x14f   :  { %610 = vmax.xlane.f32.xlu0 %v607_v33 }
 0x154   :  { %v608_v34 = vpop.f32.mrf.mxu3 }
 0x1c2   :  { %v611_v35 = vpop.xlane.xlu0 %610 }
 0x1c3   :  { %v612_v36 = vsub.f32 %v607_v33, %v611_v35 }
 0x1c5   :  { %v613_v37 = vmul.f32 1.442695, %v612_v36 }
 0x1c7   :  { %926 = vpow2.f32 %v613_v37 }
 0x1cd   :  { %v927_v38 = vpop.eup %926 }
 0x1ce   :  { %615 = vadd.xlane.f32.xlu0 %v927_v38 }
 0x241   :  { %v616_v39 = vpop.xlane.xlu0 %615 }
 0x242   :  { %928 = vrcp.f32 %v616_v39 }
 0x248   :  { %v929_v40 = vpop.eup %928 }
 0x249   :  { %v618_v41 = vmul.f32 %v929_v40, %v927_v38 }
 0x24b   :  { %620 = vst.msk [vmem:[#allocation2] sm:$0xff] %vm619_vm1, %v618_v41 }
 0x24c   :  { %631 = dma.vmem_to_hbm [thread:$0]  %s627_s22, 128, %s629_s25, [#allocation3]  }
 0x24d   :  { %954 = dma.done.wait [#allocation3], 128  }
 0x24e   :  { %955 = vsyncadd [#allocation3], 4294967168 }
 0x24f   :  { %636 = vsyncpa [#allocation3], 1 }

</bundles_post_ra>
